<compile_context>
chip_gen: v6e
topology: v6e:2x2x1
jax: 0.10.0
libtpu: 0.0.40
codegen_flags: <defaults>
</compile_context>

<pallas_src>
import functools

import jax
import jax.numpy as jnp
from jax.experimental import pallas as pl
from jax.experimental.pallas import tpu as pltpu

IN_F = 20      # input feature width (fixed by the module)
H = 256        # hidden width
OUT_W = 128    # lane-dense fused output width: col 0 = value, cols 1..5 = actor logits


def _round_up(n, m):
    return ((n + m - 1) // m) * m


def _actor_critic_kernel(
    x_ref,                # [TB, 20]   f32
    w1_ref, b1_ref,       # [20, 512]  bf16 (fc1_critic | fc1_actor fused), [1, 512] f32
    w2c_ref, b2c_ref,     # [256, 256] bf16, [1, 256] f32
    w2a_ref, b2a_ref,     # [256, 256] bf16, [1, 256] f32
    w3c_ref, w3a_ref,     # [256, 128] bf16 (lane-padded critic / actor heads)
    b3_ref,               # [1, 128]   f32
    out_ref,              # [TB, 128]  f32
):
    x = x_ref[...].astype(jnp.bfloat16)

    # fused layer 1: one MXU op instead of two K=20 ops; split into critic/actor halves
    h1 = jnp.dot(x, w1_ref[...], preferred_element_type=jnp.float32) + b1_ref[...]
    h1 = jnp.maximum(h1, 0.0).astype(jnp.bfloat16)   # f32 ReLU (v5e-safe), single cast
    hc = h1[:, :H]                                   # 128-lane-aligned slices (no copy)
    ha = h1[:, H:]

    # layer 2: separate 256x256 towers (block-diag fusion here would double weight bytes)
    h2c = jnp.dot(hc, w2c_ref[...], preferred_element_type=jnp.float32) + b2c_ref[...]
    h2c = jnp.maximum(h2c, 0.0).astype(jnp.bfloat16)
    h2a = jnp.dot(ha, w2a_ref[...], preferred_element_type=jnp.float32) + b2a_ref[...]
    h2a = jnp.maximum(h2a, 0.0).astype(jnp.bfloat16)

    # layer 3: two lane-padded K=256 matmuls summed in f32 -> lane-dense [TB,128] output
    # (same MXU work as one block-diag K=512 matmul, no concatenate copy)
    acc = jnp.dot(h2c, w3c_ref[...], preferred_element_type=jnp.float32)
    acc += jnp.dot(h2a, w3a_ref[...], preferred_element_type=jnp.float32)
    out_ref[...] = acc + b3_ref[...]


def prepare_params(params):
    """One-time preprocessing of PyTorch-layout params. Call once, reuse every step."""
    def wt(name):
        w, b = params[name]
        return jnp.asarray(w, jnp.float32).T, jnp.asarray(b, jnp.float32)

    w1c, b1c = wt("fc1_critic"); w2c, b2c = wt("fc2_critic"); w3c, b3c = wt("fc3_critic")
    w1a, b1a = wt("fc1_actor");  w2a, b2a = wt("fc2_actor");  w3a, b3a = wt("fc3_actor")

    # fc1 fusion: [20, 512] = [fc1_critic | fc1_actor]
    w1 = jnp.concatenate([w1c, w1a], axis=1).astype(jnp.bfloat16)
    b1 = jnp.concatenate([b1c, b1a]).reshape(1, 2 * H)

    # fc3 lane padding: critic head -> col 0, actor head -> cols 1..5 of a 128-wide slab
    w3c_pad = jnp.zeros((H, OUT_W), jnp.float32).at[:, 0:1].set(w3c).astype(jnp.bfloat16)
    w3a_pad = jnp.zeros((H, OUT_W), jnp.float32).at[:, 1:6].set(w3a).astype(jnp.bfloat16)
    b3 = jnp.zeros((1, OUT_W), jnp.float32)
    b3 = b3.at[0, 0].set(b3c[0])
    b3 = b3.at[0, 1:6].set(b3a)

    return (w1, b1,
            w2c.astype(jnp.bfloat16), b2c.reshape(1, H),
            w2a.astype(jnp.bfloat16), b2a.reshape(1, H),
            w3c_pad, w3a_pad, b3)


@functools.partial(jax.jit, static_argnames=("block_b",))
def actor_critic_forward(x, prep, block_b=1024):
    """x: [B, 20]. prep: output of prepare_params. Returns (val [B,1], pol [B,5])."""
    w1, b1, w2c, b2c, w2a, b2a, w3c, w3a, b3 = prep
    x = x.astype(jnp.float32)
    B = x.shape[0]

    tb = min(block_b, _round_up(B, 8))          # batch tile (multiple of 8 sublanes)
    b_pad = _round_up(B, tb)
    if b_pad != B:
        x = jnp.pad(x, ((0, b_pad - B), (0, 0)))
    grid = (b_pad // tb,)

    # weights: full block, constant index_map -> stay VMEM-resident across batch tiles
    const = lambda shape: pl.BlockSpec(shape, lambda i: (0, 0))

    out = pl.pallas_call(
        _actor_critic_kernel,
        out_shape=jax.ShapeDtypeStruct((b_pad, OUT_W), jnp.float32),
        grid=grid,
        in_specs=[
            pl.BlockSpec((tb, IN_F), lambda i: (i, 0)),   # x tile
            const((IN_F, 2 * H)), const((1, 2 * H)),      # fused fc1
            const((H, H)), const((1, H)),                 # fc2_critic
            const((H, H)), const((1, H)),                 # fc2_actor
            const((H, OUT_W)), const((H, OUT_W)),         # lane-padded fc3 heads
            const((1, OUT_W)),                            # fused fc3 bias
        ],
        out_specs=pl.BlockSpec((tb, OUT_W), lambda i: (i, 0)),
        compiler_params=pltpu.CompilerParams(
            dimension_semantics=("parallel",)),           # batch tiles -> v7x megacore
    )(x, w1, b1, w2c, b2c, w2a, b2a, w3c, w3a, b3)

    val = out[:B, 0:1]
    logits = out[:B, 1:6]
    # F.softmax(..., dim=0) runs over the BATCH axis; done here on the full
    # (unpadded) batch so batch tiling inside the kernel stays correct.
    pol = jax.nn.softmax(logits, axis=0)
    return val, pol


def init_params(key):
    """Deterministic synthetic init matching the nn.Module layer shapes."""
    shapes = {
        "fc1_critic": (256, 20),
        "fc2_critic": (256, 256),
        "fc3_critic": (1, 256),
        "fc1_actor": (256, 20),
        "fc2_actor": (256, 256),
        "fc3_actor": (5, 256),
    }
    params = {}
    for name, (out_f, in_f) in shapes.items():
        key, kw, kb = jax.random.split(key, 3)
        bound = 1.0 / jnp.sqrt(in_f)
        w = jax.random.uniform(kw, (out_f, in_f), jnp.float32, -bound, bound)
        b = jax.random.uniform(kb, (out_f,), jnp.float32, -bound, bound)
        params[name] = (w, b)
    return params


def _reference(x, params):
    """Pure-JAX f32 reference of the original module math."""
    def lin(h, name):
        w, b = params[name]
        return h @ w.T + b
    v = jnp.maximum(lin(x, "fc1_critic"), 0.0)
    v = jnp.maximum(lin(v, "fc2_critic"), 0.0)
    v = lin(v, "fc3_critic")
    p = jnp.maximum(lin(x, "fc1_actor"), 0.0)
    p = jnp.maximum(lin(p, "fc2_actor"), 0.0)
    logits = lin(p, "fc3_actor")
    return v, jax.nn.softmax(logits, axis=0)   # dim=0, as in the module


if __name__ == "__main__":
    key = jax.random.PRNGKey(0)
    kp, kx, kx2 = jax.random.split(key, 3)
    params = init_params(kp)
    prep = prepare_params(params)   # one-time: transposes / casts / fusion hoisted here

    # --- small single-tile case ---
    B = 8
    x = jax.random.normal(kx, (B, IN_F), jnp.float32)
    val, pol = actor_critic_forward(x, prep)
    jax.block_until_ready((val, pol))

    val_ref, pol_ref = _reference(x, params)
    assert val.shape == (B, 1) and pol.shape == (B, 5)
    # bf16 matmul inputs with f32 accumulation -> loose tolerance vs f32 reference
    assert jnp.allclose(val, val_ref, atol=3e-2, rtol=3e-2), \
        float(jnp.max(jnp.abs(val - val_ref)))
    assert jnp.allclose(pol, pol_ref, atol=3e-2, rtol=3e-2), \
        float(jnp.max(jnp.abs(pol - pol_ref)))
    assert jnp.allclose(jnp.sum(pol, axis=0), jnp.ones((5,)), atol=1e-5)

    # --- multi-tile case (exercises batch grid + padding + wrapper softmax) ---
    B2 = 40
    x2 = jax.random.normal(kx2, (B2, IN_F), jnp.float32)
    val2, pol2 = actor_critic_forward(x2, prep, block_b=16)   # 3 tiles of 16 (padded)
    jax.block_until_ready((val2, pol2))
    val2_ref, pol2_ref = _reference(x2, params)
    assert val2.shape == (B2, 1) and pol2.shape == (B2, 5)
    assert jnp.allclose(val2, val2_ref, atol=3e-2, rtol=3e-2)
    assert jnp.allclose(pol2, pol2_ref, atol=3e-2, rtol=3e-2)

    print("KERNEL_OK")
</pallas_src>

<mosaic_0001>
module attributes {stable_mosaic.version = 11 : i64} {
  func.func @_actor_critic_kernel(%arg0: i32, %arg1: memref<8x20xf32, #tpu.memory_space<vmem>>, %arg2: memref<20x512xbf16, #tpu.memory_space<vmem>>, %arg3: memref<1x512xf32, #tpu.memory_space<vmem>>, %arg4: memref<256x256xbf16, #tpu.memory_space<vmem>>, %arg5: memref<1x256xf32, #tpu.memory_space<vmem>>, %arg6: memref<256x256xbf16, #tpu.memory_space<vmem>>, %arg7: memref<1x256xf32, #tpu.memory_space<vmem>>, %arg8: memref<256x128xbf16, #tpu.memory_space<vmem>>, %arg9: memref<256x128xbf16, #tpu.memory_space<vmem>>, %arg10: memref<1x128xf32, #tpu.memory_space<vmem>>, %arg11: memref<8x128xf32, #tpu.memory_space<vmem>>) attributes {dimension_semantics = [#tpu.dimension_semantics<parallel>], iteration_bounds = array<i64: 1>, scalar_prefetch = 0 : i64, scratch_operands = 0 : i64, tpu.core_type = #tpu.core_type<tc>, window_params = [{transform_indices = @transform_0, window_bounds = array<i64: 8, 20>}, {pipeline_mode = #tpu.pipeline_mode<synchronous>, transform_indices = @transform_1, window_bounds = array<i64: 20, 512>}, {pipeline_mode = #tpu.pipeline_mode<synchronous>, transform_indices = @transform_2, window_bounds = array<i64: 1, 512>}, {pipeline_mode = #tpu.pipeline_mode<synchronous>, transform_indices = @transform_3, window_bounds = array<i64: 256, 256>}, {pipeline_mode = #tpu.pipeline_mode<synchronous>, transform_indices = @transform_4, window_bounds = array<i64: 1, 256>}, {pipeline_mode = #tpu.pipeline_mode<synchronous>, transform_indices = @transform_5, window_bounds = array<i64: 256, 256>}, {pipeline_mode = #tpu.pipeline_mode<synchronous>, transform_indices = @transform_6, window_bounds = array<i64: 1, 256>}, {pipeline_mode = #tpu.pipeline_mode<synchronous>, transform_indices = @transform_7, window_bounds = array<i64: 256, 128>}, {pipeline_mode = #tpu.pipeline_mode<synchronous>, transform_indices = @transform_8, window_bounds = array<i64: 256, 128>}, {pipeline_mode = #tpu.pipeline_mode<synchronous>, transform_indices = @transform_9, window_bounds = array<i64: 1, 128>}, {transform_indices = @transform_10, window_bounds = array<i64: 8, 128>}]} {
    %c0 = arith.constant 0 : index
    %c0_0 = arith.constant 0 : index
    %0 = vector.load %arg1[%c0, %c0_0] : memref<8x20xf32, #tpu.memory_space<vmem>>, vector<8x20xf32>
    %1 = arith.truncf %0 : vector<8x20xf32> to vector<8x20xbf16>
    %c0_1 = arith.constant 0 : index
    %c0_2 = arith.constant 0 : index
    %2 = vector.load %arg2[%c0_1, %c0_2] : memref<20x512xbf16, #tpu.memory_space<vmem>>, vector<20x512xbf16>
    %cst = arith.constant dense<0.000000e+00> : vector<8x512xf32>
    %3 = tpu.matmul %1, %2, %cst {dimension_numbers = #tpu.dot_dimension_numbers<[1], [0], [0], [1], [0, 0, 1, 1], [], []>} : vector<8x20xbf16>, vector<20x512xbf16>, vector<8x512xf32> -> vector<8x512xf32>
    %c0_3 = arith.constant 0 : index
    %c0_4 = arith.constant 0 : index
    %4 = vector.load %arg3[%c0_3, %c0_4] : memref<1x512xf32, #tpu.memory_space<vmem>>, vector<1x512xf32>
    %5 = vector.broadcast %4 : vector<1x512xf32> to vector<8x512xf32>
    %6 = arith.addf %3, %5 : vector<8x512xf32>
    %cst_5 = arith.constant 0.000000e+00 : f32
    %7 = vector.broadcast %cst_5 : f32 to vector<8x512xf32>
    %8 = arith.maximumf %6, %7 : vector<8x512xf32>
    %9 = arith.truncf %8 : vector<8x512xf32> to vector<8x512xbf16>
    %10 = vector.extract_strided_slice %9 {offsets = [0, 0], sizes = [8, 256], strides = [1, 1]} : vector<8x512xbf16> to vector<8x256xbf16>
    %11 = vector.extract_strided_slice %9 {offsets = [0, 256], sizes = [8, 256], strides = [1, 1]} : vector<8x512xbf16> to vector<8x256xbf16>
    %c0_6 = arith.constant 0 : index
    %c0_7 = arith.constant 0 : index
    %12 = vector.load %arg4[%c0_6, %c0_7] : memref<256x256xbf16, #tpu.memory_space<vmem>>, vector<256x256xbf16>
    %cst_8 = arith.constant dense<0.000000e+00> : vector<8x256xf32>
    %13 = tpu.matmul %10, %12, %cst_8 {dimension_numbers = #tpu.dot_dimension_numbers<[1], [0], [0], [1], [0, 0, 1, 1], [], []>} : vector<8x256xbf16>, vector<256x256xbf16>, vector<8x256xf32> -> vector<8x256xf32>
    %c0_9 = arith.constant 0 : index
    %c0_10 = arith.constant 0 : index
    %14 = vector.load %arg5[%c0_9, %c0_10] : memref<1x256xf32, #tpu.memory_space<vmem>>, vector<1x256xf32>
    %15 = vector.broadcast %14 : vector<1x256xf32> to vector<8x256xf32>
    %16 = arith.addf %13, %15 : vector<8x256xf32>
    %cst_11 = arith.constant 0.000000e+00 : f32
    %17 = vector.broadcast %cst_11 : f32 to vector<8x256xf32>
    %18 = arith.maximumf %16, %17 : vector<8x256xf32>
    %19 = arith.truncf %18 : vector<8x256xf32> to vector<8x256xbf16>
    %c0_12 = arith.constant 0 : index
    %c0_13 = arith.constant 0 : index
    %20 = vector.load %arg6[%c0_12, %c0_13] : memref<256x256xbf16, #tpu.memory_space<vmem>>, vector<256x256xbf16>
    %cst_14 = arith.constant dense<0.000000e+00> : vector<8x256xf32>
    %21 = tpu.matmul %11, %20, %cst_14 {dimension_numbers = #tpu.dot_dimension_numbers<[1], [0], [0], [1], [0, 0, 1, 1], [], []>} : vector<8x256xbf16>, vector<256x256xbf16>, vector<8x256xf32> -> vector<8x256xf32>
    %c0_15 = arith.constant 0 : index
    %c0_16 = arith.constant 0 : index
    %22 = vector.load %arg7[%c0_15, %c0_16] : memref<1x256xf32, #tpu.memory_space<vmem>>, vector<1x256xf32>
    %23 = vector.broadcast %22 : vector<1x256xf32> to vector<8x256xf32>
    %24 = arith.addf %21, %23 : vector<8x256xf32>
    %cst_17 = arith.constant 0.000000e+00 : f32
    %25 = vector.broadcast %cst_17 : f32 to vector<8x256xf32>
    %26 = arith.maximumf %24, %25 : vector<8x256xf32>
    %27 = arith.truncf %26 : vector<8x256xf32> to vector<8x256xbf16>
    %c0_18 = arith.constant 0 : index
    %c0_19 = arith.constant 0 : index
    %28 = vector.load %arg8[%c0_18, %c0_19] : memref<256x128xbf16, #tpu.memory_space<vmem>>, vector<256x128xbf16>
    %cst_20 = arith.constant dense<0.000000e+00> : vector<8x128xf32>
    %29 = tpu.matmul %19, %28, %cst_20 {dimension_numbers = #tpu.dot_dimension_numbers<[1], [0], [0], [1], [0, 0, 1, 1], [], []>} : vector<8x256xbf16>, vector<256x128xbf16>, vector<8x128xf32> -> vector<8x128xf32>
    %c0_21 = arith.constant 0 : index
    %c0_22 = arith.constant 0 : index
    %30 = vector.load %arg9[%c0_21, %c0_22] : memref<256x128xbf16, #tpu.memory_space<vmem>>, vector<256x128xbf16>
    %cst_23 = arith.constant dense<0.000000e+00> : vector<8x128xf32>
    %31 = tpu.matmul %27, %30, %cst_23 {dimension_numbers = #tpu.dot_dimension_numbers<[1], [0], [0], [1], [0, 0, 1, 1], [], []>} : vector<8x256xbf16>, vector<256x128xbf16>, vector<8x128xf32> -> vector<8x128xf32>
    %32 = arith.addf %29, %31 : vector<8x128xf32>
    %c0_24 = arith.constant 0 : index
    %c0_25 = arith.constant 0 : index
    %33 = vector.load %arg10[%c0_24, %c0_25] : memref<1x128xf32, #tpu.memory_space<vmem>>, vector<1x128xf32>
    %34 = vector.broadcast %33 : vector<1x128xf32> to vector<8x128xf32>
    %35 = arith.addf %32, %34 : vector<8x128xf32>
    %c0_26 = arith.constant 0 : index
    %c0_27 = arith.constant 0 : index
    %36 = vector.load %arg11[%c0_26, %c0_27] : memref<8x128xf32, #tpu.memory_space<vmem>>, vector<8x128xf32>
    tpu.vector_store %arg11[%c0_26, %c0_27], %35 {strides = array<i32>} : memref<8x128xf32, #tpu.memory_space<vmem>>, vector<8x128xf32>,
    return
  }
  func.func @transform_0(%arg0: i32) -> (i32, i32) {
    %c0_i32 = arith.constant 0 : i32
    %c0_i32_0 = arith.constant 0 : i32
    return %arg0, %c0_i32 : i32, i32
  }
  func.func @transform_1(%arg0: i32) -> (i32, i32) {
    %c0_i32 = arith.constant 0 : i32
    %c0_i32_0 = arith.constant 0 : i32
    %c0_i32_1 = arith.constant 0 : i32
    return %c0_i32, %c0_i32_0 : i32, i32
  }
  func.func @transform_2(%arg0: i32) -> (i32, i32) {
    %c0_i32 = arith.constant 0 : i32
    %c0_i32_0 = arith.constant 0 : i32
    %c0_i32_1 = arith.constant 0 : i32
    return %c0_i32, %c0_i32_0 : i32, i32
  }
  func.func @transform_3(%arg0: i32) -> (i32, i32) {
    %c0_i32 = arith.constant 0 : i32
    %c0_i32_0 = arith.constant 0 : i32
    %c0_i32_1 = arith.constant 0 : i32
    return %c0_i32, %c0_i32_0 : i32, i32
  }
  func.func @transform_4(%arg0: i32) -> (i32, i32) {
    %c0_i32 = arith.constant 0 : i32
    %c0_i32_0 = arith.constant 0 : i32
    %c0_i32_1 = arith.constant 0 : i32
    return %c0_i32, %c0_i32_0 : i32, i32
  }
  func.func @transform_5(%arg0: i32) -> (i32, i32) {
    %c0_i32 = arith.constant 0 : i32
    %c0_i32_0 = arith.constant 0 : i32
    %c0_i32_1 = arith.constant 0 : i32
    return %c0_i32, %c0_i32_0 : i32, i32
  }
  func.func @transform_6(%arg0: i32) -> (i32, i32) {
    %c0_i32 = arith.constant 0 : i32
    %c0_i32_0 = arith.constant 0 : i32
    %c0_i32_1 = arith.constant 0 : i32
    return %c0_i32, %c0_i32_0 : i32, i32
  }
  func.func @transform_7(%arg0: i32) -> (i32, i32) {
    %c0_i32 = arith.constant 0 : i32
    %c0_i32_0 = arith.constant 0 : i32
    %c0_i32_1 = arith.constant 0 : i32
    return %c0_i32, %c0_i32_0 : i32, i32
  }
  func.func @transform_8(%arg0: i32) -> (i32, i32) {
    %c0_i32 = arith.constant 0 : i32
    %c0_i32_0 = arith.constant 0 : i32
    %c0_i32_1 = arith.constant 0 : i32
    return %c0_i32, %c0_i32_0 : i32, i32
  }
  func.func @transform_9(%arg0: i32) -> (i32, i32) {
    %c0_i32 = arith.constant 0 : i32
    %c0_i32_0 = arith.constant 0 : i32
    %c0_i32_1 = arith.constant 0 : i32
    return %c0_i32, %c0_i32_0 : i32, i32
  }
  func.func @transform_10(%arg0: i32) -> (i32, i32) {
    %c0_i32 = arith.constant 0 : i32
    %c0_i32_0 = arith.constant 0 : i32
    return %arg0, %c0_i32 : i32, i32
  }
}

</mosaic_0001>

<bundles_post_ra>
// kernel: actor_critic_forward.1
= control target key start
LH: loop header
LB: loop body
LE: loop exit
PB: predicated region body
PF: predicated region fallthrough
CT: control target
= control target key end

     0   :  { %15 = vsyncpa [#allocation3], 0  ;;  %s1722_s0 = inlined_call_operand.hbm [shape: f32[8,20], index: 0, kind: input, shape index: {}]   ;;  %s1723_s1 = inlined_call_operand.hbm [shape: bf16[20,512], index: 1, kind: input, shape index: {}]   ;;  %s1724_s2 = inlined_call_operand.vmem [shape: f32[1,512], index: 2, kind: input, shape index: {}]   ;;  %s1725_s3 = inlined_call_operand.hbm [shape: bf16[256,256], index: 3, kind: input, shape index: {}]   ;;  %s1726_s4 = inlined_call_operand.vmem [shape: f32[1,256], index: 4, kind: input, shape index: {}]   ;;  %s1727_s5 = inlined_call_operand.hbm [shape: bf16[256,256], index: 5, kind: input, shape index: {}]   ;;  %s1728_s6 = inlined_call_operand.hbm [shape: f32[1,256], index: 6, kind: input, shape index: {}]   ;;  %s1729_s7 = inlined_call_operand.hbm [shape: bf16[256,128], index: 7, kind: input, shape index: {}]   ;;  %s1730_s8 = inlined_call_operand.hbm [shape: bf16[256,128], index: 8, kind: input, shape index: {}]   ;;  %s1731_s9 = inlined_call_operand.vmem [shape: f32[1,128], index: 9, kind: input, shape index: {}]   ;;  %s1732_s10 = inlined_call_operand.vmem [shape: f32[8,128], index: 10, kind: output, shape index: {}]  }
   0x1   :  { %16 = vsyncpa [#allocation5], 0 }
   0x2   :  { %17 = vsyncpa [#allocation8], 0 }
   0x3   :  { %18 = vsyncpa [#allocation11], 0  ;;  %s1598_s13 = smov [#allocation4]  }
   0x4   :  { %s34_s14 = sshll.u32 %s1598_s13, 4  ;;  %s35_s14 = int_to_ptr.vmem [resolvable:$true] %s34_s14 }
   0x5   :  { %s1458_s15 = scalar_lea.vmem %s35_s14, 768  ;;  %p1463_p1 = scmp.lt.s32.totalorder %s35_s14, %s35_s14 }
   0x6   :  { %p1459_p0 = scmp.ne.s32.totalorder %s35_s14, %s1458_s15  ;;  %p1464_p2 = scmp.lt.s32.totalorder %s1458_s15, %s1458_s15 }
   0x8   :  { %p1465_p3 = por %p1464_p2, %p1463_p1 }
   0xa   :  { %p1466_p4 = pnand %p1465_p3, %p1459_p0 }
   0xc   :  { %1469 = shalt.err (!%p1466_p4)
}
   0xd   :  { %s1599_s16 = smov 256   ;;  %s1600_s17 = smov 16  }
   0xe   :  { %40 = dma.hbm_to_vmem [thread:$0]  %s1723_s1, 768, %s35_s14, [#allocation5], %s1599_s16, %s1599_s16, %s1600_s17  }
   0xf   :  { %s1601_s20 = smov [#allocation7]   ;;  %s1602_s22 = smov [#allocation10]  }
  0x10   :  { %s62_s21 = sshll.u32 %s1601_s20, 4  ;;  %s84_s23 = sshll.u32 %s1602_s22, 4  ;;  %s63_s21 = int_to_ptr.vmem [resolvable:$true] %s62_s21  ;;  %s85_s23 = int_to_ptr.vmem [resolvable:$true] %s84_s23 }
  0x11   :  { %s1478_s24 = scalar_lea.vmem %s63_s21, 4096  ;;  %p1483_p6 = scmp.lt.s32.totalorder %s63_s21, %s63_s21 }
  0x12   :  { %p1479_p5 = scmp.ne.s32.totalorder %s63_s21, %s1478_s24  ;;  %p1484_p7 = scmp.lt.s32.totalorder %s1478_s24, %s1478_s24 }
  0x14   :  { %p1485_p8 = por %p1484_p7, %p1483_p6 }
  0x16   :  { %p1486_p9 = pnand %p1485_p8, %p1479_p5 }
  0x18   :  { %1489 = shalt.err (!%p1486_p9)
}
  0x19   :  { %s1603_s25 = smov 128   ;;  %s1604_s26 = smov 8  }
  0x1a   :  { %68 = dma.hbm_to_vmem [thread:$0]  %s1727_s5, 4096, %s63_s21, [#allocation8], %s1603_s25, %s1603_s25, %s1604_s26  }
  0x1b   :  { %s1498_s1 = scalar_lea.vmem %s85_s23, 2048  ;;  %p1503_p11 = scmp.lt.s32.totalorder %s85_s23, %s85_s23 }
  0x1c   :  { %p1499_p10 = scmp.ne.s32.totalorder %s85_s23, %s1498_s1  ;;  %p1504_p12 = scmp.lt.s32.totalorder %s1498_s1, %s1498_s1 }
  0x1e   :  { %p1505_p13 = por %p1504_p12, %p1503_p11 }
  0x20   :  { %p1506_p0 = pnand %p1505_p13, %p1499_p10 }
  0x22   :  { %1509 = shalt.err (!%p1506_p0)
}
  0x23   :  { %s1605_s29 = smov 64   ;;  %s1606_s30 = smov 4  }
  0x24   :  { %90 = dma.hbm_to_vmem [thread:$0]  %s1729_s7, 2048, %s85_s23, [#allocation11], %s1605_s29, %s1605_s29, %s1606_s30  }
  0x25   :  { %s1607_s13 = smov [#allocation2]   ;;  %s1608_s5 = smov [#allocation6]  }
  0x26   :  { %s25_s14 = sshll.u32 %s1607_s13, 4  ;;  %s48_s15 = sshll.u32 %s1608_s5, 4  ;;  %s26_s14 = int_to_ptr.vmem [resolvable:$true] %s25_s14  ;;  %s49_s15 = int_to_ptr.vmem [resolvable:$true] %s48_s15 }
  0x27   :  { %s1518_s16 = scalar_lea.vmem %s26_s14, 128  ;;  %p1523_p2 = scmp.lt.s32.totalorder %s26_s14, %s26_s14 }
  0x28   :  { %p1519_p1 = scmp.ne.s32.totalorder %s26_s14, %s1518_s16  ;;  %p1524_p3 = scmp.lt.s32.totalorder %s1518_s16, %s1518_s16 }
  0x2a   :  { %p1525_p4 = por %p1524_p3, %p1523_p2 }
  0x2c   :  { %p1526_p5 = pnand %p1525_p4, %p1519_p1 }
  0x2e   :  { %1529 = shalt.err (!%p1526_p5)
}
  0x2f   :  { %28 = dma.hbm_to_vmem [thread:$0]  %s1722_s0, 128, %s26_s14, [#allocation3]  }
  0x30   :  { %s1538_s19 = scalar_lea.vmem %s49_s15, 4096  ;;  %p1543_p7 = scmp.lt.s32.totalorder %s49_s15, %s49_s15 }
  0x31   :  { %p1539_p6 = scmp.ne.s32.totalorder %s49_s15, %s1538_s19  ;;  %p1544_p8 = scmp.lt.s32.totalorder %s1538_s19, %s1538_s19 }
  0x33   :  { %p1545_p9 = por %p1544_p8, %p1543_p7 }
  0x35   :  { %p1546_p10 = pnand %p1545_p9, %p1539_p6 }
  0x37   :  { %1549 = shalt.err (!%p1546_p10)
}
  0x38   :  { %54 = dma.hbm_to_vmem [thread:$0]  %s1725_s3, 4096, %s49_s15, [#allocation5], %s1603_s25, %s1603_s25, %s1604_s26  }
  0x39   :  { %s1609_s21 = smov [#allocation9]   ;;  %s1610_s23 = smov [#allocation12]  }
  0x3a   :  { %s75_s22 = sshll.u32 %s1609_s21, 4  ;;  %s96_s0 = sshll.u32 %s1610_s23, 4  ;;  %s76_s22 = int_to_ptr.vmem [resolvable:$true] %s75_s22  ;;  %s97_s0 = int_to_ptr.vmem [resolvable:$true] %s96_s0 }
  0x3b   :  { %s1558_s24 = scalar_lea.vmem %s76_s22, 32  ;;  %p1563_p12 = scmp.lt.s32.totalorder %s76_s22, %s76_s22 }
  0x3c   :  { %p1559_p11 = scmp.ne.s32.totalorder %s76_s22, %s1558_s24  ;;  %p1564_p13 = scmp.lt.s32.totalorder %s1558_s24, %s1558_s24 }
  0x3e   :  { %p1565_p0 = por %p1564_p13, %p1563_p12 }
  0x40   :  { %p1566_p1 = pnand %p1565_p0, %p1559_p11 }
  0x42   :  { %1569 = shalt.err (!%p1566_p1)
}
  0x43   :  { %78 = dma.hbm_to_vmem [thread:$0]  %s1728_s6, 32, %s76_s22, [#allocation8]  }
  0x44   :  { %s1578_s1 = scalar_lea.vmem %s97_s0, 2048  ;;  %p1583_p3 = scmp.lt.s32.totalorder %s97_s0, %s97_s0 }
  0x45   :  { %p1579_p2 = scmp.ne.s32.totalorder %s97_s0, %s1578_s1  ;;  %p1584_p4 = scmp.lt.s32.totalorder %s1578_s1, %s1578_s1 }
  0x47   :  { %p1585_p5 = por %p1584_p4, %p1583_p3 }
  0x49   :  { %p1586_p6 = pnand %p1585_p5, %p1579_p2 }
  0x4b   :  { %1589 = shalt.err (!%p1586_p6)
}
  0x4c   :  { %102 = dma.hbm_to_vmem [thread:$0]  %s1730_s8, 2048, %s97_s0, [#allocation11], %s1605_s29, %s1605_s29, %s1606_s30  }
  0x4d   :  { %1590 = dma.done.wait [#allocation3], 128  }
  0x4e   :  { %1591 = vsyncadd [#allocation3], 4294967168 }
  0x4f   :  { %1592 = dma.done.wait [#allocation5], 4864  }
  0x50   :  { %1593 = vsyncadd [#allocation5], 4294962432 }
  0x51   :  { %1594 = dma.done.wait [#allocation8], 4128  }
  0x52   :  { %1595 = vsyncadd [#allocation8], 4294963168 }
  0x53   :  { %1596 = dma.done.wait [#allocation11], 4096  }
  0x54   :  { %1597 = vsyncadd [#allocation11], 4294963200  ;;  %v1611_v0 = vmov 0   ;;  %v133_v1 = vld [vmem:[#allocation4 + $0x20] sm:$0x33]  ;;  %vm191_vm0 = vcmask 1041408  }
  0x55   :  { %236 = vmatprep.mubr.bf16.mxu0 %v1611_v0  ;;  %277 = vmatprep.mubr.bf16.mxu1 %v1611_v0  ;;  %v134_v2 = vld [vmem:[#allocation4 + $0x28] sm:$0x33]  ;;  %v1150_v3 = vcombine.high %v133_v1, %v133_v1  ;;  %v1149_v5 = vcombine.low %v133_v1, %v133_v1  ;;  %v1316_v7 = vld [vmem:[#allocation4 + $0x4] ss:$16 sps:$4 sm:$0xff]   ;;  %v1320_v11 = vld [vmem:[#allocation4] ss:$16 sps:$4 sm:$0xff]  }
  0x56   :  { %v1152_v4 = vcombine.high %v134_v2, %v134_v2  ;;  %v1151_v6 = vcombine.low %v134_v2, %v134_v2  ;;  %v1318_v8 = vld [vmem:[#allocation4 + $0xc] ss:$16 sps:$4 sm:$0xff]   ;;  %v1321_v12 = vld [vmem:[#allocation4 + $0x8] ss:$16 sps:$4 sm:$0xff]   ;;  %vm187_vm1 = vcmask 162816  }
  0x57   :  { %1153 = vmatprep.subr.msk.bf16.mxu0 %vm191_vm0, %v1150_v3  ;;  %v193_v9 = vsel %vm191_vm0, %v1149_v5, 0  ;;  %v127_v13 = vld [vmem:[#allocation2] sm:$0xff]  ;;  %v1324_v14 = vld [vmem:[#allocation6 + $0x74] ss:$8 sps:$4 sm:$0xff]   ;;  %v1322_v17 = vld [vmem:[#allocation6 + $0x70] ss:$8 sps:$4 sm:$0xff]  }
  0x58   :  { %1155 = vmatprep.subr.msk.bf16.mxu1 %vm191_vm0, %v1152_v4  ;;  %v199_v10 = vsel %vm191_vm0, %v1151_v6, 0  ;;  %217 = vmatpush1.bf16.msra.mxu0 %v193_v9  ;;  %v1327_v15 = vld [vmem:[#allocation7 + $0x74] ss:$8 sps:$4 sm:$0xff]   ;;  %v128_v16 = vpack.c.bf16 %v127_v13, %v127_v13  ;;  %v1325_v18 = vld [vmem:[#allocation7 + $0x70] ss:$8 sps:$4 sm:$0xff]  }
  0x59   :  { %258 = vmatpush1.bf16.msra.mxu1 %v199_v10  ;;  %218 = vmatprep.subr.bf16.mxu0 %v1316_v7  ;;  %v1330_v19 = vld [vmem:[#allocation6 + $0x64] ss:$8 sps:$4 sm:$0xff]   ;;  %v1328_v21 = vld [vmem:[#allocation6 + $0x60] ss:$8 sps:$4 sm:$0xff]   ;;  %v1336_v23 = vld [vmem:[#allocation6 + $0x54] ss:$8 sps:$4 sm:$0xff]  }
  0x5a   :  { %259 = vmatprep.subr.bf16.mxu1 %v1318_v8  ;;  %v1333_v20 = vld [vmem:[#allocation7 + $0x64] ss:$8 sps:$4 sm:$0xff]   ;;  %v1331_v22 = vld [vmem:[#allocation7 + $0x60] ss:$8 sps:$4 sm:$0xff]   ;;  %v1339_v24 = vld [vmem:[#allocation7 + $0x54] ss:$8 sps:$4 sm:$0xff]  }
  0x5b   :  { %v1334_v25 = vld [vmem:[#allocation6 + $0x50] ss:$8 sps:$4 sm:$0xff]   ;;  %v1342_v27 = vld [vmem:[#allocation6 + $0x44] ss:$8 sps:$4 sm:$0xff]   ;;  %v1340_v29 = vld [vmem:[#allocation6 + $0x40] ss:$8 sps:$4 sm:$0xff]  }
  0x5c   :  { %219 = vmatpush1.bf16.msra.mxu0 %v1320_v11  ;;  %v1337_v26 = vld [vmem:[#allocation7 + $0x50] ss:$8 sps:$4 sm:$0xff]   ;;  %v1345_v28 = vld [vmem:[#allocation7 + $0x44] ss:$8 sps:$4 sm:$0xff]   ;;  %v1343_v30 = vld [vmem:[#allocation7 + $0x40] ss:$8 sps:$4 sm:$0xff]  }
  0x5d   :  { %260 = vmatpush1.bf16.msra.mxu1 %v1321_v12  ;;  %498 = vmatprep.subr.bf16.mxu0 %v1324_v14  ;;  %v1348_v31 = vld [vmem:[#allocation6 + $0x34] ss:$8 sps:$4 sm:$0xff]   ;;  %v1346_v33 = vld [vmem:[#allocation6 + $0x30] ss:$8 sps:$4 sm:$0xff]   ;;  %v1354_v35 = vld [vmem:[#allocation6 + $0x24] ss:$8 sps:$4 sm:$0xff]  }
  0x5e   :  { %747 = vmatprep.subr.bf16.mxu1 %v1327_v15  ;;  %v1351_v32 = vld [vmem:[#allocation7 + $0x34] ss:$8 sps:$4 sm:$0xff]   ;;  %v1349_v34 = vld [vmem:[#allocation7 + $0x30] ss:$8 sps:$4 sm:$0xff]   ;;  %v1357_v36 = vld [vmem:[#allocation7 + $0x24] ss:$8 sps:$4 sm:$0xff]  }
  0x5f   :  { %1154 = vmatmul.mubr.msk.bf16.vlgmr.msra.gmra.mxu0 %vm187_vm1, %v128_v16  ;;  %v1352_v37 = vld [vmem:[#allocation6 + $0x20] ss:$8 sps:$4 sm:$0xff]   ;;  %v1360_v39 = vld [vmem:[#allocation6 + $0x14] ss:$8 sps:$4 sm:$0xff]   ;;  %v1358_v41 = vld [vmem:[#allocation6 + $0x10] ss:$8 sps:$4 sm:$0xff]  }
  0x60   :  { %1156 = vmatmul.mubr.msk.bf16.vlgmr.msra.gmra.mxu1 %vm187_vm1, %v128_v16  ;;  %499 = vmatpush1.bf16.msra.mxu0 %v1322_v17  ;;  %v1355_v38 = vld [vmem:[#allocation7 + $0x20] ss:$8 sps:$4 sm:$0xff]   ;;  %v1363_v40 = vld [vmem:[#allocation7 + $0x14] ss:$8 sps:$4 sm:$0xff]   ;;  %v1361_v42 = vld [vmem:[#allocation7 + $0x10] ss:$8 sps:$4 sm:$0xff]   ;;  %v137_v17 = vlaneseq }
  0x61   :  { %748 = vmatpush1.bf16.msra.mxu1 %v1325_v18  ;;  %500 = vmatprep.subr.bf16.mxu0 %v1330_v19  ;;  %v1366_v43 = vld [vmem:[#allocation6 + $0x4] ss:$8 sps:$4 sm:$0xff]   ;;  %v1364_v45 = vld [vmem:[#allocation6] ss:$8 sps:$4 sm:$0xff]   ;;  %v1372_v47 = vld [vmem:[#allocation6 + $0xf4] ss:$8 sps:$4 sm:$0xff]  }
  0x62   :  { %749 = vmatprep.subr.bf16.mxu1 %v1333_v20  ;;  %v1369_v44 = vld [vmem:[#allocation7 + $0x4] ss:$8 sps:$4 sm:$0xff]   ;;  %v1367_v46 = vld [vmem:[#allocation7] ss:$8 sps:$4 sm:$0xff]   ;;  %v1375_v48 = vld [vmem:[#allocation7 + $0xf4] ss:$8 sps:$4 sm:$0xff]  }
  0x63   :  { %v1370_v49 = vld [vmem:[#allocation6 + $0xf0] ss:$8 sps:$4 sm:$0xff]   ;;  %v1378_v51 = vld [vmem:[#allocation6 + $0xe4] ss:$8 sps:$4 sm:$0xff]   ;;  %v1376_v53 = vld [vmem:[#allocation6 + $0xe0] ss:$8 sps:$4 sm:$0xff]  }
  0x64   :  { %501 = vmatpush1.bf16.msra.mxu0 %v1328_v21  ;;  %v1373_v50 = vld [vmem:[#allocation7 + $0xf0] ss:$8 sps:$4 sm:$0xff]   ;;  %v1381_v52 = vld [vmem:[#allocation7 + $0xe4] ss:$8 sps:$4 sm:$0xff]   ;;  %v1379_v54 = vld [vmem:[#allocation7 + $0xe0] ss:$8 sps:$4 sm:$0xff]  }
  0x65   :  { %750 = vmatpush1.bf16.msra.mxu1 %v1331_v22  ;;  %502 = vmatprep.subr.bf16.mxu0 %v1336_v23  ;;  %v1384_v55 = vld [vmem:[#allocation6 + $0xd4] ss:$8 sps:$4 sm:$0xff]   ;;  %v1382_v57 = vld [vmem:[#allocation6 + $0xd0] ss:$8 sps:$4 sm:$0xff]   ;;  %v1390_v59 = vld [vmem:[#allocation6 + $0xc4] ss:$8 sps:$4 sm:$0xff]  }
  0x66   :  { %751 = vmatprep.subr.bf16.mxu1 %v1339_v24  ;;  %v1387_v56 = vld [vmem:[#allocation7 + $0xd4] ss:$8 sps:$4 sm:$0xff]   ;;  %v1385_v58 = vld [vmem:[#allocation7 + $0xd0] ss:$8 sps:$4 sm:$0xff]   ;;  %v1393_v60 = vld [vmem:[#allocation7 + $0xc4] ss:$8 sps:$4 sm:$0xff]  }
  0x67   :  { %v1388_v61 = vld [vmem:[#allocation6 + $0xc0] ss:$8 sps:$4 sm:$0xff]   ;;  %v1396_v63 = vld [vmem:[#allocation6 + $0xb4] ss:$8 sps:$4 sm:$0xff]   ;;  %v1394_v1 = vld [vmem:[#allocation6 + $0xb0] ss:$8 sps:$4 sm:$0xff]  }
  0x68   :  { %503 = vmatpush1.bf16.msra.mxu0 %v1334_v25  ;;  %v1391_v62 = vld [vmem:[#allocation7 + $0xc0] ss:$8 sps:$4 sm:$0xff]   ;;  %v1399_v0 = vld [vmem:[#allocation7 + $0xb4] ss:$8 sps:$4 sm:$0xff]   ;;  %v1397_v2 = vld [vmem:[#allocation7 + $0xb0] ss:$8 sps:$4 sm:$0xff]  }
  0x69   :  { %752 = vmatpush1.bf16.msra.mxu1 %v1337_v26  ;;  %504 = vmatprep.subr.bf16.mxu0 %v1342_v27  ;;  %v1402_v3 = vld [vmem:[#allocation6 + $0xa4] ss:$8 sps:$4 sm:$0xff]   ;;  %v1400_v5 = vld [vmem:[#allocation6 + $0xa0] ss:$8 sps:$4 sm:$0xff]   ;;  %v1408_v7 = vld [vmem:[#allocation6 + $0x94] ss:$8 sps:$4 sm:$0xff]  }
  0x6a   :  { %753 = vmatprep.subr.bf16.mxu1 %v1345_v28  ;;  %v1405_v4 = vld [vmem:[#allocation7 + $0xa4] ss:$8 sps:$4 sm:$0xff]   ;;  %v1403_v6 = vld [vmem:[#allocation7 + $0xa0] ss:$8 sps:$4 sm:$0xff]   ;;  %v1411_v8 = vld [vmem:[#allocation7 + $0x94] ss:$8 sps:$4 sm:$0xff]  }
  0x6b   :  { %v1406_v9 = vld [vmem:[#allocation6 + $0x90] ss:$8 sps:$4 sm:$0xff]   ;;  %v1414_v11 = vld [vmem:[#allocation6 + $0x84] ss:$8 sps:$4 sm:$0xff]   ;;  %v1412_v13 = vld [vmem:[#allocation6 + $0x80] ss:$8 sps:$4 sm:$0xff]  }
  0x6c   :  { %505 = vmatpush1.bf16.msra.mxu0 %v1340_v29  ;;  %v1409_v10 = vld [vmem:[#allocation7 + $0x90] ss:$8 sps:$4 sm:$0xff]   ;;  %v1417_v12 = vld [vmem:[#allocation7 + $0x84] ss:$8 sps:$4 sm:$0xff]   ;;  %v1415_v14 = vld [vmem:[#allocation7 + $0x80] ss:$8 sps:$4 sm:$0xff]  }
  0x6d   :  { %754 = vmatpush1.bf16.msra.mxu1 %v1343_v30  ;;  %506 = vmatprep.subr.bf16.mxu0 %v1348_v31  ;;  %v1418_v15 = vld [vmem:[#allocation12 + $0x78] sm:$0xff]   ;;  %v138_v18 = vshrl.u32 %v137_v17, 7  ;;  %v135_v21 = vld [vmem:[%s1724_s2] sm:$0xf] }
  0x6e   :  { %755 = vmatprep.subr.bf16.mxu1 %v1351_v32  ;;  %v1419_v16 = vld [vmem:[#allocation10 + $0x78] sm:$0xff]  }
  0x6f   :  { %v1700_v19 = vsub.s32 0, %v138_v18  ;;  %v147_v20 = vsub.s32 2, %v138_v18  ;;  %v1705_v22 = vsub.s32 1, %v138_v18  ;;  %v151_v23 = vsub.s32 3, %v138_v18 }
  0x70   :  { %507 = vmatpush1.bf16.msra.mxu0 %v1346_v33 }
  0x71   :  { %756 = vmatpush1.bf16.msra.mxu1 %v1349_v34  ;;  %508 = vmatprep.subr.bf16.mxu0 %v1354_v35  ;;  %v140_v24 = vrot.slane %v135_v21, %v1700_v19  ;;  %v148_v25 = vrot.slane %v135_v21, %v147_v20  ;;  %v144_v26 = vrot.slane %v135_v21, %v1705_v22 }
  0x72   :  { %757 = vmatprep.subr.bf16.mxu1 %v1357_v36  ;;  %v152_v27 = vrot.slane %v135_v21, %v151_v23 }
  0x74   :  { %509 = vmatpush1.bf16.msra.mxu0 %v1352_v37 }
  0x75   :  { %758 = vmatpush1.bf16.msra.mxu1 %v1355_v38  ;;  %510 = vmatprep.subr.bf16.mxu0 %v1360_v39 }
  0x76   :  { %759 = vmatprep.subr.bf16.mxu1 %v1363_v40 }
  0x78   :  { %511 = vmatpush1.bf16.msra.mxu0 %v1358_v41 }
  0x79   :  { %760 = vmatpush1.bf16.msra.mxu1 %v1361_v42  ;;  %512 = vmatprep.subr.bf16.mxu0 %v1366_v43 }
  0x7a   :  { %761 = vmatprep.subr.bf16.mxu1 %v1369_v44 }
  0x7c   :  { %513 = vmatpush1.bf16.msra.mxu0 %v1364_v45 }
  0x7d   :  { %762 = vmatpush1.bf16.msra.mxu1 %v1367_v46  ;;  %514 = vmatprep.subr.bf16.mxu0 %v1372_v47  ;;  %v1420_v46 = vld [vmem:[#allocation12 + $0x38] sm:$0xff]  }
  0x7e   :  { %763 = vmatprep.subr.bf16.mxu1 %v1375_v48  ;;  %v1421_v47 = vld [vmem:[#allocation10 + $0x38] sm:$0xff]  }
  0x80   :  { %515 = vmatpush2.bf16.msra.mxu0 %v1370_v49 }
  0x81   :  { %764 = vmatpush2.bf16.msra.mxu1 %v1373_v50  ;;  %516 = vmatprep.subr.bf16.mxu0 %v1378_v51  ;;  %v1422_v50 = vld [vmem:[#allocation12 + $0x70] sm:$0xff]  }
  0x82   :  { %765 = vmatprep.subr.bf16.mxu1 %v1381_v52  ;;  %v1423_v51 = vld [vmem:[#allocation10 + $0x70] sm:$0xff]  }
  0x83   :  { %v1424_v52 = vld [vmem:[#allocation12 + $0x30] sm:$0xff]  }
  0x84   :  { %517 = vmatpush2.bf16.msra.mxu0 %v1376_v53  ;;  %v1425_v53 = vld [vmem:[#allocation10 + $0x30] sm:$0xff]  }
  0x85   :  { %766 = vmatpush2.bf16.msra.mxu1 %v1379_v54  ;;  %518 = vmatprep.subr.bf16.mxu0 %v1384_v55  ;;  %v1426_v54 = vld [vmem:[#allocation12 + $0x68] sm:$0xff]  }
  0x86   :  { %767 = vmatprep.subr.bf16.mxu1 %v1387_v56  ;;  %v1427_v55 = vld [vmem:[#allocation10 + $0x68] sm:$0xff]  }
  0x87   :  { %v1428_v56 = vld [vmem:[#allocation12 + $0x28] sm:$0xff]  }
  0x88   :  { %519 = vmatpush2.bf16.msra.mxu0 %v1382_v57  ;;  %v1429_v57 = vld [vmem:[#allocation10 + $0x28] sm:$0xff]  }
  0x89   :  { %768 = vmatpush2.bf16.msra.mxu1 %v1385_v58  ;;  %520 = vmatprep.subr.bf16.mxu0 %v1390_v59  ;;  %v1430_v58 = vld [vmem:[#allocation12 + $0x60] sm:$0xff]  }
  0x8a   :  { %769 = vmatprep.subr.bf16.mxu1 %v1393_v60  ;;  %v1431_v59 = vld [vmem:[#allocation10 + $0x60] sm:$0xff]  }
  0x8b   :  { %v1432_v60 = vld [vmem:[#allocation12 + $0x20] sm:$0xff]  }
  0x8c   :  { %521 = vmatpush2.bf16.msra.mxu0 %v1388_v61  ;;  %v1433_v61 = vld [vmem:[#allocation10 + $0x20] sm:$0xff]  }
  0x8d   :  { %770 = vmatpush2.bf16.msra.mxu1 %v1391_v62  ;;  %522 = vmatprep.subr.bf16.mxu0 %v1396_v63  ;;  %v1434_v62 = vld [vmem:[#allocation12 + $0x58] sm:$0xff]  }
  0x8e   :  { %771 = vmatprep.subr.bf16.mxu1 %v1399_v0  ;;  %v1435_v63 = vld [vmem:[#allocation10 + $0x58] sm:$0xff]  }
  0x8f   :  { %v1436_v0 = vld [vmem:[#allocation12 + $0x18] sm:$0xff]  }
  0x90   :  { %523 = vmatpush2.bf16.msra.mxu0 %v1394_v1  ;;  %v1437_v1 = vld [vmem:[#allocation10 + $0x18] sm:$0xff]  }
  0x91   :  { %772 = vmatpush2.bf16.msra.mxu1 %v1397_v2  ;;  %524 = vmatprep.subr.bf16.mxu0 %v1402_v3  ;;  %v1438_v2 = vld [vmem:[#allocation12 + $0x50] sm:$0xff]  }
  0x92   :  { %773 = vmatprep.subr.bf16.mxu1 %v1405_v4  ;;  %v1439_v3 = vld [vmem:[#allocation10 + $0x50] sm:$0xff]  }
  0x93   :  { %v1440_v4 = vld [vmem:[#allocation12 + $0x10] sm:$0xff]  }
  0x94   :  { %525 = vmatpush2.bf16.msra.mxu0 %v1400_v5  ;;  %v1441_v5 = vld [vmem:[#allocation10 + $0x10] sm:$0xff]  }
  0x95   :  { %774 = vmatpush2.bf16.msra.mxu1 %v1403_v6  ;;  %526 = vmatprep.subr.bf16.mxu0 %v1408_v7  ;;  %v1442_v6 = vld [vmem:[#allocation12 + $0x48] sm:$0xff]  }
  0x96   :  { %775 = vmatprep.subr.bf16.mxu1 %v1411_v8  ;;  %v1443_v7 = vld [vmem:[#allocation10 + $0x48] sm:$0xff]  }
  0x97   :  { %v1444_v8 = vld [vmem:[#allocation12 + $0x8] sm:$0xff]  }
  0x98   :  { %527 = vmatpush2.bf16.msra.mxu0 %v1406_v9  ;;  %v1445_v9 = vld [vmem:[#allocation10 + $0x8] sm:$0xff]  }
  0x99   :  { %776 = vmatpush2.bf16.msra.mxu1 %v1409_v10  ;;  %528 = vmatprep.subr.bf16.mxu0 %v1414_v11  ;;  %v1446_v10 = vld [vmem:[#allocation12 + $0x40] sm:$0xff]  }
  0x9a   :  { %777 = vmatprep.subr.bf16.mxu1 %v1417_v12  ;;  %v1447_v11 = vld [vmem:[#allocation10 + $0x40] sm:$0xff]  }
  0x9b   :  { %v1448_v12 = vld [vmem:[#allocation12] sm:$0xff]  }
  0x9c   :  { %529 = vmatpush2.bf16.msra.mxu0 %v1412_v13  ;;  %v1449_v13 = vld [vmem:[#allocation10] sm:$0xff]  }
  0x9d   :  { %778 = vmatpush2.bf16.msra.mxu1 %v1415_v14  ;;  %1254 = vmatprep.subr.bf16.mxu0 %v1418_v15  ;;  %v326_v14 = vld [vmem:[%s1726_s4] sm:$0x3]  ;;  %v575_v15 = vld [vmem:[#allocation9] sm:$0x3] }
  0x9e   :  { %1276 = vmatprep.subr.bf16.mxu1 %v1419_v16  ;;  %v331_v16 = vrot.slane %v326_v14, %v1700_v19  ;;  %v580_v17 = vrot.slane %v575_v15, %v1700_v19  ;;  %v335_v18 = vrot.slane %v326_v14, %v1705_v22  ;;  %v584_v20 = vrot.slane %v575_v15, %v1705_v22 }
 0x11f   :  { %v238_v28 = vpop.f32.mrf.mxu0 }
 0x120   :  { %v279_v29 = vpop.f32.mrf.mxu1  ;;  %v239_v30 = vadd.f32 %v238_v28, %v140_v24 }
 0x121   :  { %v280_v31 = vadd.f32 %v279_v29, %v148_v25  ;;  %v240_v32 = vpop.f32.mrf.mxu0 }
 0x122   :  { %v281_v33 = vpop.f32.mrf.mxu1  ;;  %v241_v34 = vadd.f32 %v240_v32, %v144_v26  ;;  %v286_v36 = vmax.f32 %v239_v30, 0.0 }
 0x123   :  { %v282_v35 = vadd.f32 %v281_v33, %v152_v27  ;;  %v288_v37 = vmax.f32 %v280_v31, 0.0  ;;  %v242_v38 = vpop.f32.mrf.mxu0 }
 0x124   :  { %v283_v39 = vpop.f32.mrf.mxu1  ;;  %v287_v40 = vmax.f32 %v241_v34, 0.0  ;;  %v290_v48 = vpack.c.bf16 %v286_v36, %v286_v36 }
 0x125   :  { %v289_v41 = vmax.f32 %v282_v35, 0.0  ;;  %v243_v42 = vpop.f32.mrf.mxu0  ;;  %v292_v49 = vpack.c.bf16 %v288_v37, %v288_v37 }
 0x126   :  { %v284_v43 = vpop.f32.mrf.mxu1  ;;  %v291_v44 = vpack.c.bf16 %v287_v40, %v287_v40 }
 0x127   :  { %v293_v45 = vpack.c.bf16 %v289_v41, %v289_v41 }
 0x128   :  { %530 = vmatprep.mubr.bf16.mxu0 %v291_v44 }
 0x129   :  { %779 = vmatprep.mubr.bf16.mxu1 %v293_v45  ;;  %531 = vmatmul.mubr.bf16.vlgmr.msra.gmra.mxu0 %v290_v48 }
 0x12a   :  { %780 = vmatmul.mubr.bf16.vlgmr.msra.gmra.mxu1 %v292_v49  ;;  %1255 = vmatpush3.bf16.msra.mxu0 %v1420_v46  ;;  %v1253_v46 = vld [vmem:[%s1731_s9] ss:$0 sm:$0xff] }
 0x12b   :  { %1277 = vmatpush3.bf16.msra.mxu1 %v1421_v47  ;;  %1256 = vmatprep.subr.bf16.mxu0 %v1422_v50 }
 0x12c   :  { %1278 = vmatprep.subr.bf16.mxu1 %v1423_v51 }
 0x12e   :  { %1257 = vmatpush3.bf16.msra.mxu0 %v1424_v52 }
 0x12f   :  { %1279 = vmatpush3.bf16.msra.mxu1 %v1425_v53  ;;  %1258 = vmatprep.subr.bf16.mxu0 %v1426_v54 }
 0x130   :  { %1280 = vmatprep.subr.bf16.mxu1 %v1427_v55 }
 0x132   :  { %1259 = vmatpush3.bf16.msra.mxu0 %v1428_v56 }
 0x133   :  { %1281 = vmatpush3.bf16.msra.mxu1 %v1429_v57  ;;  %1260 = vmatprep.subr.bf16.mxu0 %v1430_v58 }
 0x134   :  { %1282 = vmatprep.subr.bf16.mxu1 %v1431_v59 }
 0x136   :  { %1261 = vmatpush3.bf16.msra.mxu0 %v1432_v60 }
 0x137   :  { %1283 = vmatpush3.bf16.msra.mxu1 %v1433_v61  ;;  %1262 = vmatprep.subr.bf16.mxu0 %v1434_v62 }
 0x138   :  { %1284 = vmatprep.subr.bf16.mxu1 %v1435_v63 }
 0x13a   :  { %1263 = vmatpush3.bf16.msra.mxu0 %v1436_v0 }
 0x13b   :  { %1285 = vmatpush3.bf16.msra.mxu1 %v1437_v1  ;;  %1264 = vmatprep.subr.bf16.mxu0 %v1438_v2 }
 0x13c   :  { %1286 = vmatprep.subr.bf16.mxu1 %v1439_v3 }
 0x13e   :  { %1265 = vmatpush3.bf16.msra.mxu0 %v1440_v4 }
 0x13f   :  { %1287 = vmatpush3.bf16.msra.mxu1 %v1441_v5  ;;  %1266 = vmatprep.subr.bf16.mxu0 %v1442_v6 }
 0x140   :  { %1288 = vmatprep.subr.bf16.mxu1 %v1443_v7 }
 0x142   :  { %1267 = vmatpush3.bf16.msra.mxu0 %v1444_v8 }
 0x143   :  { %1289 = vmatpush3.bf16.msra.mxu1 %v1445_v9  ;;  %1268 = vmatprep.subr.bf16.mxu0 %v1446_v10 }
 0x144   :  { %1290 = vmatprep.subr.bf16.mxu1 %v1447_v11 }
 0x146   :  { %1269 = vmatpush3.bf16.msra.mxu0 %v1448_v12 }
 0x147   :  { %1291 = vmatpush3.bf16.msra.mxu1 %v1449_v13 }
 0x1e9   :  { %v532_v21 = vpop.f32.mrf.mxu0 }
 0x1ea   :  { %v781_v23 = vpop.f32.mrf.mxu1  ;;  %v533_v24 = vadd.f32 %v532_v21, %v331_v16 }
 0x1eb   :  { %v782_v25 = vadd.f32 %v781_v23, %v580_v17  ;;  %v534_v26 = vpop.f32.mrf.mxu0 }
 0x1ec   :  { %v783_v27 = vpop.f32.mrf.mxu1  ;;  %v535_v28 = vadd.f32 %v534_v26, %v335_v18  ;;  %v539_v30 = vmax.f32 %v533_v24, 0.0 }
 0x1ed   :  { %v784_v29 = vadd.f32 %v783_v27, %v584_v20  ;;  %v788_v31 = vmax.f32 %v782_v25, 0.0  ;;  %v536_v32 = vpop.f32.mrf.mxu0 }
 0x1ee   :  { %v785_v33 = vpop.f32.mrf.mxu1  ;;  %v540_v34 = vmax.f32 %v535_v28, 0.0  ;;  %v541_v39 = vpack.c.bf16 %v539_v30, %v539_v30 }
 0x1ef   :  { %v789_v35 = vmax.f32 %v784_v29, 0.0  ;;  %v537_v36 = vpop.f32.mrf.mxu0  ;;  %v790_v22 = vpack.c.bf16 %v788_v31, %v788_v31 }
 0x1f0   :  { %v786_v19 = vpop.f32.mrf.mxu1  ;;  %v542_v37 = vpack.c.bf16 %v540_v34, %v540_v34 }
 0x1f1   :  { %v791_v38 = vpack.c.bf16 %v789_v35, %v789_v35 }
 0x1f2   :  { %1120 = vmatprep.mubr.bf16.mxu1 %v542_v37 }
 0x1f3   :  { %984 = vmatprep.mubr.bf16.mxu0 %v791_v38  ;;  %1121 = vmatmul.mubr.bf16.vlgmr.msra.gmra.mxu1 %v541_v39 }
 0x1f4   :  { %985 = vmatmul.mubr.bf16.vlgmr.msra.gmra.mxu0 %v790_v22 }
 0x2b3   :  { %v1292_v41 = vpop.f32.mrf.mxu1 }
 0x2b4   :  { %v1270_v40 = vpop.f32.mrf.mxu0 }
 0x2b5   :  { %v1293_v43 = vpop.f32.mrf.mxu1 }
 0x2b6   :  { %v1271_v42 = vpop.f32.mrf.mxu0  ;;  %v1294_v45 = vadd.f32 %v1293_v43, %v1292_v41 }
 0x2b7   :  { %v1272_v44 = vadd.f32 %v1271_v42, %v1270_v40  ;;  %v1295_v48 = vpop.f32.mrf.mxu1 }
 0x2b8   :  { %v1273_v47 = vpop.f32.mrf.mxu0 }
 0x2b9   :  { %v1123_v49 = vadd.f32 %v1294_v45, %v1272_v44  ;;  %v1296_v51 = vpop.f32.mrf.mxu1 }
 0x2ba   :  { %v1274_v50 = vpop.f32.mrf.mxu0 }
 0x2bb   :  { %v1135_v52 = vadd.f32 %v1253_v46, %v1123_v49 }
 0x2bd   :  { %1136 = vst [vmem:[%s1732_s10] sm:$0xff] %v1135_v52 }
 0x2be   :  { %1141 = vsyncpa [#allocation3], 1 }
 0x2bf   :  { %1142 = vsyncpa [#allocation5], 1 }
 0x2c0   :  { %1143 = vsyncpa [#allocation8], 1 }
 0x2c1   :  { %1144 = vsyncpa [#allocation11], 1 }

</bundles_post_ra>
